<compile_context>
chip_gen: v5e
topology: v5e:2x2
jax: 0.10.0
libtpu: 0.0.40
codegen_flags: <defaults>
</compile_context>

<pallas_src>
import jax
import jax.numpy as jnp
from jax.experimental import pallas as pl
from jax.experimental.pallas import tpu as pltpu


def _rsage_kernel(x_ref, idx_ref, wpre_ref, wnnx_ref, wnna_ref, bias_ref, o_ref):
    """RSAGEConv2d forward for one batch element (channel-major layout).

    x_ref    : (C_in, N)        vertex features
    idx_ref  : (N, K)  int32    neighbor indices (edge_index[0][b])
    wpre_ref : (C_out, C_in)    pre_nn 1x1-conv weight
    wnnx_ref : (C_out, C_in)    nn 1x1-conv weight slice acting on x
    wnna_ref : (C_out, C_out)   nn 1x1-conv weight slice acting on aggr_out
    bias_ref : (C_out, 1)       additive bias
    o_ref    : (C_out, N)       output
    """
    x = x_ref[...]                      # (C_in, N)
    idx = idx_ref[...]                  # (N, K) int32
    n = x.shape[1]
    k = idx.shape[1]

    # pre_nn(x_j) == gather(pre_nn(x)): compute the 1x1 conv + relu once
    # over all N vertices on the MXU, gather afterwards.
    h = jnp.maximum(
        jnp.dot(wpre_ref[...], x, preferred_element_type=jnp.float32), 0.0
    )  # (C_out, N)

    # Max-aggregation over the K neighbors.  Each gather is a one-hot matmul:
    # gathered_j[c, n_dst] = h[c, idx[n_dst, j]].
    src_iota = jax.lax.broadcasted_iota(jnp.int32, (n, n), 1)  # (N_dst, N_src)

    def gather_neighbor(j):
        onehot = (idx[:, j:j + 1] == src_iota).astype(jnp.float32)   # (N_dst, N_src)
        return jax.lax.dot_general(
            h, onehot, (((1,), (1,)), ((), ())),
            preferred_element_type=jnp.float32,
        )  # (C_out, N_dst)

    aggr = gather_neighbor(0)
    for j in range(1, k):
        aggr = jnp.maximum(aggr, gather_neighbor(j))

    # nn(cat([x, aggr_out], channel-dim)) with relu, then bias.
    out = jnp.maximum(
        jnp.dot(wnnx_ref[...], x, preferred_element_type=jnp.float32)
        + jnp.dot(wnna_ref[...], aggr, preferred_element_type=jnp.float32),
        0.0,
    )
    out = out + bias_ref[...]           # (C_out, 1) broadcast over N

    # F.normalize(out, dim=channel): out / max(||out||_2, eps)
    # (max(sqrt(s), eps) == sqrt(max(s, eps^2)), so rsqrt on the EUP is exact-equivalent)
    eps = jnp.float32(1e-12)
    sumsq = jnp.sum(out * out, axis=0, keepdims=True)       # (1, N)
    inv = jax.lax.rsqrt(jnp.maximum(sumsq, eps * eps))
    o_ref[...] = (out * inv).astype(o_ref.dtype)


def rsage_conv2d(x, edge_index, w_pre, w_nn, bias):
    """RSAGEConv2d.forward (relative=False, aggr hardcoded to max, norm=True).

    x          : (B, C_in, N, 1) float32
    edge_index : (2, B, N, K)    int32  (only edge_index[0] is used by forward)
    w_pre      : (C_out, C_in)          pre_nn conv weight
    w_nn       : (C_out, C_in + C_out)  nn conv weight (x channels first, per the concat)
    bias       : (1, C_out, 1, 1)
    returns    : (B, C_out, N, 1) float32
    """
    B, C_in, N, W1 = x.shape
    assert W1 == 1, "last spatial dim must be 1"
    K = edge_index.shape[-1]
    C_out = w_pre.shape[0]
    assert w_nn.shape == (C_out, C_in + C_out)

    # Glue only: free reshapes / tiny parameter slices, no HBM round trips of x.
    x_cn = x[..., 0].astype(jnp.float32)                     # (B, C_in, N)
    idx = edge_index[0].astype(jnp.int32)                    # (B, N, K)
    w_pre_f = w_pre.astype(jnp.float32)
    w_nn_x = w_nn[:, :C_in].astype(jnp.float32)              # acts on x
    w_nn_a = w_nn[:, C_in:].astype(jnp.float32)              # acts on aggr_out
    bias2d = bias.reshape(C_out, 1).astype(jnp.float32)

    out = pl.pallas_call(
        _rsage_kernel,
        out_shape=jax.ShapeDtypeStruct((B, C_out, N), jnp.float32),
        grid_spec=pltpu.PrefetchScalarGridSpec(
            num_scalar_prefetch=0,
            grid=(B,),
            in_specs=[
                pl.BlockSpec((None, C_in, N), lambda b: (b, 0, 0)),
                pl.BlockSpec((None, N, K), lambda b: (b, 0, 0)),
                pl.BlockSpec((C_out, C_in), lambda b: (0, 0)),
                pl.BlockSpec((C_out, C_in), lambda b: (0, 0)),
                pl.BlockSpec((C_out, C_out), lambda b: (0, 0)),
                pl.BlockSpec((C_out, 1), lambda b: (0, 0)),
            ],
            out_specs=pl.BlockSpec((None, C_out, N), lambda b: (b, 0, 0)),
        ),
        compiler_params=pltpu.CompilerParams(
            dimension_semantics=("parallel",),
        ),
    )(x_cn, idx, w_pre_f, w_nn_x, w_nn_a, bias2d)

    return out[..., None]   # (B, C_out, N, 1)


def _reference_forward(x, edge_index, w_pre, w_nn, bias):
    """Pure-JAX transcription of the PyTorch forward (for verification)."""
    idx = edge_index[0]                                        # (B, N, K)
    xs = x[..., 0]                                             # (B, C_in, N)
    # batched_index_select: x_j[b, :, n, j] = x[b, :, idx[b, n, j]]
    x_j = jax.vmap(lambda xb, ib: xb[:, ib])(xs, idx)          # (B, C_in, N, K)
    h_j = jnp.maximum(jnp.einsum('oc,bcnk->bonk', w_pre, x_j), 0.0)   # pre_nn + relu
    aggr = jnp.max(h_j, axis=-1, keepdims=True)                # (B, C_out, N, 1)
    cat = jnp.concatenate([x, aggr], axis=1)                   # (B, C_in+C_out, N, 1)
    out = jnp.maximum(jnp.einsum('oc,bcnw->bonw', w_nn, cat), 0.0)    # nn + relu
    out = out + bias
    norm = jnp.sqrt(jnp.sum(out * out, axis=1, keepdims=True))
    return out / jnp.maximum(norm, 1e-12)                      # F.normalize(dim=1)


if __name__ == "__main__":
    key = jax.random.PRNGKey(0)
    k_x, k_e, k_wp, k_wn, k_b = jax.random.split(key, 5)

    B, C_in, C_out, N, K = 2, 32, 64, 16, 9    # k=9 is the module default

    x = (0.5 * jax.random.normal(k_x, (B, C_in, N, 1))).astype(jnp.float32)
    edge_index = jax.random.randint(k_e, (2, B, N, K), 0, N, dtype=jnp.int32)
    w_pre = (0.2 * jax.random.normal(k_wp, (C_out, C_in))).astype(jnp.float32)
    w_nn = (0.2 * jax.random.normal(k_wn, (C_out, C_in + C_out))).astype(jnp.float32)
    bias = (0.1 * jax.random.normal(k_b, (1, C_out, 1, 1))).astype(jnp.float32)

    out = rsage_conv2d(x, edge_index, w_pre, w_nn, bias)
    out = jax.block_until_ready(out)

    ref = _reference_forward(x, edge_index, w_pre, w_nn, bias)
    assert out.shape == (B, C_out, N, 1), out.shape
    assert jnp.allclose(out, ref, rtol=1e-4, atol=1e-4), float(
        jnp.max(jnp.abs(out - ref))
    )

    print("KERNEL_OK")
</pallas_src>

<mosaic_0001>
module attributes {stable_mosaic.version = 11 : i64} {
  func.func @_rsage_kernel(%arg0: i32, %arg1: memref<1x32x16xf32, #tpu.memory_space<vmem>>, %arg2: memref<1x16x9xi32, #tpu.memory_space<vmem>>, %arg3: memref<64x32xf32, #tpu.memory_space<vmem>>, %arg4: memref<64x32xf32, #tpu.memory_space<vmem>>, %arg5: memref<64x64xf32, #tpu.memory_space<vmem>>, %arg6: memref<64x1xf32, #tpu.memory_space<vmem>>, %arg7: memref<1x64x16xf32, #tpu.memory_space<vmem>>) attributes {dimension_semantics = [#tpu.dimension_semantics<parallel>], iteration_bounds = array<i64: 2>, scalar_prefetch = 0 : i64, scratch_operands = 0 : i64, tpu.core_type = #tpu.core_type<tc>, window_params = [{transform_indices = @transform_0, window_bounds = array<i64: 1, 32, 16>}, {transform_indices = @transform_1, window_bounds = array<i64: 1, 16, 9>}, {pipeline_mode = #tpu.pipeline_mode<synchronous>, transform_indices = @transform_2, window_bounds = array<i64: 64, 32>}, {pipeline_mode = #tpu.pipeline_mode<synchronous>, transform_indices = @transform_3, window_bounds = array<i64: 64, 32>}, {pipeline_mode = #tpu.pipeline_mode<synchronous>, transform_indices = @transform_4, window_bounds = array<i64: 64, 64>}, {pipeline_mode = #tpu.pipeline_mode<synchronous>, transform_indices = @transform_5, window_bounds = array<i64: 64, 1>}, {transform_indices = @transform_6, window_bounds = array<i64: 1, 64, 16>}]} {
    %c0 = arith.constant 0 : index
    %c0_0 = arith.constant 0 : index
    %c0_1 = arith.constant 0 : index
    %0 = vector.load %arg1[%c0, %c0_0, %c0_1] : memref<1x32x16xf32, #tpu.memory_space<vmem>>, vector<1x32x16xf32>
    %1 = vector.shape_cast %0 : vector<1x32x16xf32> to vector<32x16xf32>
    %c0_2 = arith.constant 0 : index
    %c0_3 = arith.constant 0 : index
    %c0_4 = arith.constant 0 : index
    %2 = vector.load %arg2[%c0_2, %c0_3, %c0_4] : memref<1x16x9xi32, #tpu.memory_space<vmem>>, vector<1x16x9xi32>
    %3 = vector.shape_cast %2 : vector<1x16x9xi32> to vector<16x9xi32>
    %c0_5 = arith.constant 0 : index
    %c0_6 = arith.constant 0 : index
    %4 = vector.load %arg3[%c0_5, %c0_6] : memref<64x32xf32, #tpu.memory_space<vmem>>, vector<64x32xf32>
    %cst = arith.constant dense<0.000000e+00> : vector<64x16xf32>
    %5 = tpu.matmul %4, %1, %cst {dimension_numbers = #tpu.dot_dimension_numbers<[1], [0], [0], [1], [0, 0, 1, 1], [], []>} : vector<64x32xf32>, vector<32x16xf32>, vector<64x16xf32> -> vector<64x16xf32>
    %cst_7 = arith.constant 0.000000e+00 : f32
    %6 = vector.broadcast %cst_7 : f32 to vector<64x16xf32>
    %7 = arith.maximumf %5, %6 : vector<64x16xf32>
    %8 = tpu.iota {dimensions = array<i32: 1>} : vector<16x16xi32>
    %9 = vector.extract_strided_slice %3 {offsets = [0, 0], sizes = [16, 1], strides = [1, 1]} : vector<16x9xi32> to vector<16x1xi32>
    %10 = vector.broadcast %9 : vector<16x1xi32> to vector<16x16xi32>
    %11 = arith.cmpi eq, %10, %8 : vector<16x16xi32>
    %12 = arith.extui %11 : vector<16x16xi1> to vector<16x16xi32>
    %13 = arith.sitofp %12 : vector<16x16xi32> to vector<16x16xf32>
    %cst_8 = arith.constant dense<0.000000e+00> : vector<64x16xf32>
    %14 = tpu.matmul %7, %13, %cst_8 {dimension_numbers = #tpu.dot_dimension_numbers<[1], [1], [0], [0], [0, 0, 1, 0], [], []>} : vector<64x16xf32>, vector<16x16xf32>, vector<64x16xf32> -> vector<64x16xf32>
    %15 = vector.extract_strided_slice %3 {offsets = [0, 1], sizes = [16, 1], strides = [1, 1]} : vector<16x9xi32> to vector<16x1xi32>
    %16 = vector.broadcast %15 : vector<16x1xi32> to vector<16x16xi32>
    %17 = arith.cmpi eq, %16, %8 : vector<16x16xi32>
    %18 = arith.extui %17 : vector<16x16xi1> to vector<16x16xi32>
    %19 = arith.sitofp %18 : vector<16x16xi32> to vector<16x16xf32>
    %cst_9 = arith.constant dense<0.000000e+00> : vector<64x16xf32>
    %20 = tpu.matmul %7, %19, %cst_9 {dimension_numbers = #tpu.dot_dimension_numbers<[1], [1], [0], [0], [0, 0, 1, 0], [], []>} : vector<64x16xf32>, vector<16x16xf32>, vector<64x16xf32> -> vector<64x16xf32>
    %21 = arith.maximumf %14, %20 : vector<64x16xf32>
    %22 = vector.extract_strided_slice %3 {offsets = [0, 2], sizes = [16, 1], strides = [1, 1]} : vector<16x9xi32> to vector<16x1xi32>
    %23 = vector.broadcast %22 : vector<16x1xi32> to vector<16x16xi32>
    %24 = arith.cmpi eq, %23, %8 : vector<16x16xi32>
    %25 = arith.extui %24 : vector<16x16xi1> to vector<16x16xi32>
    %26 = arith.sitofp %25 : vector<16x16xi32> to vector<16x16xf32>
    %cst_10 = arith.constant dense<0.000000e+00> : vector<64x16xf32>
    %27 = tpu.matmul %7, %26, %cst_10 {dimension_numbers = #tpu.dot_dimension_numbers<[1], [1], [0], [0], [0, 0, 1, 0], [], []>} : vector<64x16xf32>, vector<16x16xf32>, vector<64x16xf32> -> vector<64x16xf32>
    %28 = arith.maximumf %21, %27 : vector<64x16xf32>
    %29 = vector.extract_strided_slice %3 {offsets = [0, 3], sizes = [16, 1], strides = [1, 1]} : vector<16x9xi32> to vector<16x1xi32>
    %30 = vector.broadcast %29 : vector<16x1xi32> to vector<16x16xi32>
    %31 = arith.cmpi eq, %30, %8 : vector<16x16xi32>
    %32 = arith.extui %31 : vector<16x16xi1> to vector<16x16xi32>
    %33 = arith.sitofp %32 : vector<16x16xi32> to vector<16x16xf32>
    %cst_11 = arith.constant dense<0.000000e+00> : vector<64x16xf32>
    %34 = tpu.matmul %7, %33, %cst_11 {dimension_numbers = #tpu.dot_dimension_numbers<[1], [1], [0], [0], [0, 0, 1, 0], [], []>} : vector<64x16xf32>, vector<16x16xf32>, vector<64x16xf32> -> vector<64x16xf32>
    %35 = arith.maximumf %28, %34 : vector<64x16xf32>
    %36 = vector.extract_strided_slice %3 {offsets = [0, 4], sizes = [16, 1], strides = [1, 1]} : vector<16x9xi32> to vector<16x1xi32>
    %37 = vector.broadcast %36 : vector<16x1xi32> to vector<16x16xi32>
    %38 = arith.cmpi eq, %37, %8 : vector<16x16xi32>
    %39 = arith.extui %38 : vector<16x16xi1> to vector<16x16xi32>
    %40 = arith.sitofp %39 : vector<16x16xi32> to vector<16x16xf32>
    %cst_12 = arith.constant dense<0.000000e+00> : vector<64x16xf32>
    %41 = tpu.matmul %7, %40, %cst_12 {dimension_numbers = #tpu.dot_dimension_numbers<[1], [1], [0], [0], [0, 0, 1, 0], [], []>} : vector<64x16xf32>, vector<16x16xf32>, vector<64x16xf32> -> vector<64x16xf32>
    %42 = arith.maximumf %35, %41 : vector<64x16xf32>
    %43 = vector.extract_strided_slice %3 {offsets = [0, 5], sizes = [16, 1], strides = [1, 1]} : vector<16x9xi32> to vector<16x1xi32>
    %44 = vector.broadcast %43 : vector<16x1xi32> to vector<16x16xi32>
    %45 = arith.cmpi eq, %44, %8 : vector<16x16xi32>
    %46 = arith.extui %45 : vector<16x16xi1> to vector<16x16xi32>
    %47 = arith.sitofp %46 : vector<16x16xi32> to vector<16x16xf32>
    %cst_13 = arith.constant dense<0.000000e+00> : vector<64x16xf32>
    %48 = tpu.matmul %7, %47, %cst_13 {dimension_numbers = #tpu.dot_dimension_numbers<[1], [1], [0], [0], [0, 0, 1, 0], [], []>} : vector<64x16xf32>, vector<16x16xf32>, vector<64x16xf32> -> vector<64x16xf32>
    %49 = arith.maximumf %42, %48 : vector<64x16xf32>
    %50 = vector.extract_strided_slice %3 {offsets = [0, 6], sizes = [16, 1], strides = [1, 1]} : vector<16x9xi32> to vector<16x1xi32>
    %51 = vector.broadcast %50 : vector<16x1xi32> to vector<16x16xi32>
    %52 = arith.cmpi eq, %51, %8 : vector<16x16xi32>
    %53 = arith.extui %52 : vector<16x16xi1> to vector<16x16xi32>
    %54 = arith.sitofp %53 : vector<16x16xi32> to vector<16x16xf32>
    %cst_14 = arith.constant dense<0.000000e+00> : vector<64x16xf32>
    %55 = tpu.matmul %7, %54, %cst_14 {dimension_numbers = #tpu.dot_dimension_numbers<[1], [1], [0], [0], [0, 0, 1, 0], [], []>} : vector<64x16xf32>, vector<16x16xf32>, vector<64x16xf32> -> vector<64x16xf32>
    %56 = arith.maximumf %49, %55 : vector<64x16xf32>
    %57 = vector.extract_strided_slice %3 {offsets = [0, 7], sizes = [16, 1], strides = [1, 1]} : vector<16x9xi32> to vector<16x1xi32>
    %58 = vector.broadcast %57 : vector<16x1xi32> to vector<16x16xi32>
    %59 = arith.cmpi eq, %58, %8 : vector<16x16xi32>
    %60 = arith.extui %59 : vector<16x16xi1> to vector<16x16xi32>
    %61 = arith.sitofp %60 : vector<16x16xi32> to vector<16x16xf32>
    %cst_15 = arith.constant dense<0.000000e+00> : vector<64x16xf32>
    %62 = tpu.matmul %7, %61, %cst_15 {dimension_numbers = #tpu.dot_dimension_numbers<[1], [1], [0], [0], [0, 0, 1, 0], [], []>} : vector<64x16xf32>, vector<16x16xf32>, vector<64x16xf32> -> vector<64x16xf32>
    %63 = arith.maximumf %56, %62 : vector<64x16xf32>
    %64 = vector.extract_strided_slice %3 {offsets = [0, 8], sizes = [16, 1], strides = [1, 1]} : vector<16x9xi32> to vector<16x1xi32>
    %65 = vector.broadcast %64 : vector<16x1xi32> to vector<16x16xi32>
    %66 = arith.cmpi eq, %65, %8 : vector<16x16xi32>
    %67 = arith.extui %66 : vector<16x16xi1> to vector<16x16xi32>
    %68 = arith.sitofp %67 : vector<16x16xi32> to vector<16x16xf32>
    %cst_16 = arith.constant dense<0.000000e+00> : vector<64x16xf32>
    %69 = tpu.matmul %7, %68, %cst_16 {dimension_numbers = #tpu.dot_dimension_numbers<[1], [1], [0], [0], [0, 0, 1, 0], [], []>} : vector<64x16xf32>, vector<16x16xf32>, vector<64x16xf32> -> vector<64x16xf32>
    %70 = arith.maximumf %63, %69 : vector<64x16xf32>
    %c0_17 = arith.constant 0 : index
    %c0_18 = arith.constant 0 : index
    %71 = vector.load %arg4[%c0_17, %c0_18] : memref<64x32xf32, #tpu.memory_space<vmem>>, vector<64x32xf32>
    %cst_19 = arith.constant dense<0.000000e+00> : vector<64x16xf32>
    %72 = tpu.matmul %71, %1, %cst_19 {dimension_numbers = #tpu.dot_dimension_numbers<[1], [0], [0], [1], [0, 0, 1, 1], [], []>} : vector<64x32xf32>, vector<32x16xf32>, vector<64x16xf32> -> vector<64x16xf32>
    %c0_20 = arith.constant 0 : index
    %c0_21 = arith.constant 0 : index
    %73 = vector.load %arg5[%c0_20, %c0_21] : memref<64x64xf32, #tpu.memory_space<vmem>>, vector<64x64xf32>
    %cst_22 = arith.constant dense<0.000000e+00> : vector<64x16xf32>
    %74 = tpu.matmul %73, %70, %cst_22 {dimension_numbers = #tpu.dot_dimension_numbers<[1], [0], [0], [1], [0, 0, 1, 1], [], []>} : vector<64x64xf32>, vector<64x16xf32>, vector<64x16xf32> -> vector<64x16xf32>
    %75 = arith.addf %72, %74 : vector<64x16xf32>
    %cst_23 = arith.constant 0.000000e+00 : f32
    %76 = vector.broadcast %cst_23 : f32 to vector<64x16xf32>
    %77 = arith.maximumf %75, %76 : vector<64x16xf32>
    %c0_24 = arith.constant 0 : index
    %c0_25 = arith.constant 0 : index
    %78 = vector.load %arg6[%c0_24, %c0_25] : memref<64x1xf32, #tpu.memory_space<vmem>>, vector<64x1xf32>
    %79 = vector.broadcast %78 : vector<64x1xf32> to vector<64x16xf32>
    %80 = arith.addf %77, %79 : vector<64x16xf32>
    %81 = arith.mulf %80, %80 : vector<64x16xf32>
    %cst_26 = arith.constant dense<0.000000e+00> : vector<16xf32>
    %82 = vector.multi_reduction <add>, %81, %cst_26 [0] : vector<64x16xf32> to vector<16xf32>
    %83 = vector.shape_cast %82 : vector<16xf32> to vector<1x16xf32>
    %cst_27 = arith.constant 9.99999996E-13 : f32
    %cst_28 = arith.constant 9.99999996E-13 : f32
    %84 = arith.mulf %cst_27, %cst_28 : f32
    %85 = vector.broadcast %84 : f32 to vector<1x16xf32>
    %86 = arith.maximumf %83, %85 : vector<1x16xf32>
    %87 = math.rsqrt %86 : vector<1x16xf32>
    %88 = vector.broadcast %87 : vector<1x16xf32> to vector<64x16xf32>
    %89 = arith.mulf %80, %88 : vector<64x16xf32>
    %c0_29 = arith.constant 0 : index
    %c0_30 = arith.constant 0 : index
    %c0_31 = arith.constant 0 : index
    %90 = vector.load %arg7[%c0_29, %c0_30, %c0_31] : memref<1x64x16xf32, #tpu.memory_space<vmem>>, vector<1x64x16xf32>
    %91 = vector.shape_cast %90 : vector<1x64x16xf32> to vector<64x16xf32>
    %92 = vector.shape_cast %89 : vector<64x16xf32> to vector<1x64x16xf32>
    tpu.vector_store %arg7[%c0_29, %c0_30, %c0_31], %92 {strides = array<i32>} : memref<1x64x16xf32, #tpu.memory_space<vmem>>, vector<1x64x16xf32>,
    return
  }
  func.func @transform_0(%arg0: i32) -> (i32, i32, i32) {
    %c0_i32 = arith.constant 0 : i32
    %c0_i32_0 = arith.constant 0 : i32
    %c0_i32_1 = arith.constant 0 : i32
    return %arg0, %c0_i32, %c0_i32_0 : i32, i32, i32
  }
  func.func @transform_1(%arg0: i32) -> (i32, i32, i32) {
    %c0_i32 = arith.constant 0 : i32
    %c0_i32_0 = arith.constant 0 : i32
    %c0_i32_1 = arith.constant 0 : i32
    return %arg0, %c0_i32, %c0_i32_0 : i32, i32, i32
  }
  func.func @transform_2(%arg0: i32) -> (i32, i32) {
    %c0_i32 = arith.constant 0 : i32
    %c0_i32_0 = arith.constant 0 : i32
    %c0_i32_1 = arith.constant 0 : i32
    return %c0_i32, %c0_i32_0 : i32, i32
  }
  func.func @transform_3(%arg0: i32) -> (i32, i32) {
    %c0_i32 = arith.constant 0 : i32
    %c0_i32_0 = arith.constant 0 : i32
    %c0_i32_1 = arith.constant 0 : i32
    return %c0_i32, %c0_i32_0 : i32, i32
  }
  func.func @transform_4(%arg0: i32) -> (i32, i32) {
    %c0_i32 = arith.constant 0 : i32
    %c0_i32_0 = arith.constant 0 : i32
    %c0_i32_1 = arith.constant 0 : i32
    return %c0_i32, %c0_i32_0 : i32, i32
  }
  func.func @transform_5(%arg0: i32) -> (i32, i32) {
    %c0_i32 = arith.constant 0 : i32
    %c0_i32_0 = arith.constant 0 : i32
    %c0_i32_1 = arith.constant 0 : i32
    return %c0_i32, %c0_i32_0 : i32, i32
  }
  func.func @transform_6(%arg0: i32) -> (i32, i32, i32) {
    %c0_i32 = arith.constant 0 : i32
    %c0_i32_0 = arith.constant 0 : i32
    %c0_i32_1 = arith.constant 0 : i32
    return %arg0, %c0_i32, %c0_i32_0 : i32, i32, i32
  }
}

</mosaic_0001>

<bundles_post_ra>
// kernel: tpu_custom_call.1
= control target key start
LH: loop header
LB: loop body
LE: loop exit
PB: predicated region body
PF: predicated region fallthrough
CT: control target
= control target key end

     0   :  { %s1556_s21 = smov 0   ;;  %s1990_s0 = inlined_call_operand.vmem [shape: f32[2,32,16], index: 0, kind: input, shape index: {}]   ;;  %s1991_s1 = inlined_call_operand.vmem [shape: s32[2,16,9], index: 1, kind: input, shape index: {}]   ;;  %s1992_s2 = inlined_call_operand.vmem [shape: f32[64,32], index: 2, kind: input, shape index: {}]   ;;  %s1993_s3 = inlined_call_operand.vmem [shape: f32[64,32], index: 3, kind: input, shape index: {}]   ;;  %s1994_s4 = inlined_call_operand.vmem [shape: f32[64,64], index: 4, kind: input, shape index: {}]   ;;  %s1995_s5 = inlined_call_operand.vmem [shape: f32[64,1], index: 5, kind: input, shape index: {}]   ;;  %s1996_s6 = inlined_call_operand.vmem [shape: f32[2,64,16], index: 6, kind: output, shape index: {}]  }
   0x1 LB: > { %s1316_s22 = sadd.s32 4294967295, %s1509_s21   ;;  %p1320_p0 = scmp.ge.s32.totalorder %s1509_s21, 1  ;;  %s1509_s21 = sphi %s1556_s21, %s16_s21  }
   0x2   : > { %p222_p1 = scmp.lt.s32.totalorder %s1509_s21, 3 }
   0x4   : > { %p223_p2 = pnand %p1320_p0, %p222_p1 }
   0x5   : > { %p257_p3 = scmp.lt.s32.totalorder (!%p223_p2), %s1316_s22, 1 }
   0x6   : > { %226 = sbr.rel (%p223_p2) target bundleno = 718 (0x2ce), region = 44 }
   0xb   : > { %v1511_v0 = vmov 0   ;;  %v1512_v1 = vmov 1   ;;  %s1998_s22 = smov (!%p257_p3, %s1316_s22), 1  ;;  %v278_v8 = vld [vmem:[%s1992_s2] sm:$0xff]  ;;  %vm286_vm0 = vcmask 261120   ;;  %v1513_v9 = vmov 2  }
   0xc   : > { %1482 = vset.pattern.permute.xlu0 %v1511_v0  ;;  %1483 = vset.pattern.permute.xlu1 %v1512_v1  ;;  %s1462_s23 = sshll.u32 %s1998_s22, 4  ;;  %s1461_s24 = sshll.u32 %s1998_s22, 5  ;;  %v279_v10 = vld [vmem:[%s1992_s2 + $0x8] sm:$0xff]  ;;  %v1514_v11 = vmov 3   ;;  %v1515_v12 = vmov 4   ;;  %v280_v13 = vld [vmem:[%s1992_s2 + $0x10] sm:$0xff]  ;;  %v360_v22 = vlaneseq }
   0xd   : > { %1485 = vset.pattern.permute.xlu2 %v1512_v1  ;;  %s266_s27 = scalar_lea.vmem %s1991_s1, %s1462_s23  ;;  %s261_s30 = scalar_lea.vmem %s1990_s0, %s1461_s24  ;;  %v281_v14 = vld [vmem:[%s1992_s2 + $0x18] sm:$0xff]  ;;  %v1516_v15 = vmov 6   ;;  %v1517_v16 = vmov 5   ;;  %v282_v17 = vld [vmem:[%s1992_s2 + $0x20] sm:$0xff]  ;;  %v1518_v18 = vmov 7   ;;  %v283_v19 = vld [vmem:[%s1992_s2 + $0x28] sm:$0xff] }
   0xe   : > { %v1575_v2 = vld [vmem:[%s266_s27 + $0x8] sm:$0xff]  ;;  %v1577_v3 = vld [vmem:[%s261_s30 + $0x18] sm:$0xff]  ;;  %v1579_v4 = vld [vmem:[%s261_s30 + $0x10] sm:$0xff]  ;;  %v1519_v24 = vmov 8   ;;  %v1630_v25 = vand.u32 127, %v360_v22  ;;  %vm374_vm1 = vcmask 130048  }
   0xf   : > { %366 = vperm.xlu0 %1482, %v1575_v2   ;;  %323 = vmatpush.msra.mxu0 %v1577_v3  ;;  %v276_v5 = vld [vmem:[%s266_s27] sm:$0xff]  ;;  %v1584_v6 = vld [vmem:[%s261_s30 + $0x8] sm:$0xff]  ;;  %v284_v20 = vld [vmem:[%s1992_s2 + $0x30] sm:$0xff]  ;;  %v1520_v28 = vmov 0.0   ;;  %s1463_s29 = sshll.u32 %s1998_s22, 6 }
  0x10   : > { %450 = vperm.xlu1 %1483, %v1575_v2   ;;  %447 = vperm.xlu2 %1485, %v276_v5   ;;  %v1587_v7 = vld [vmem:[%s261_s30] sm:$0xff]  ;;  %v285_v21 = vld [vmem:[%s1992_s2 + $0x38] sm:$0xff]  ;;  %s271_s8 = scalar_lea.vmem %s1996_s6, %s1463_s29 }
  0x11   : > { %324 = vmatpush.msra.mxu0 %v1579_v4 }
  0x13   : > { %325 = vmatpush.msra.mxu0 %v1584_v6 }
  0x15   : > { %326 = vmatpush.msra.mxu0 %v1587_v7 }
  0x16   : > { %1327 = vmatmul.msk.f32.vlgmr.msra.gmra.mxu0 %vm286_vm0, %v278_v8 }
  0x17   : > { %363 = vperm.xlu0 %1482, %v276_v5  }
  0x18   : > { %1484 = vset.pattern.permute.xlu1 %v1513_v9  ;;  %1486 = vset.pattern.permute.xlu2 %v1513_v9 }
  0x19   : > { %517 = vperm.xlu1 %1484, %v1575_v2   ;;  %514 = vperm.xlu2 %1486, %v276_v5  }
  0x1e   : > { %1328 = vmatmul.msk.f32.gmra.mxu0 %vm286_vm0, %v279_v10 }
  0x1f   : > { %1487 = vset.pattern.permute.xlu0 %v1514_v11 }
  0x20   : > { %584 = vperm.xlu0 %1487, %v1575_v2  }
  0x21   : > { %1489 = vset.pattern.permute.xlu2 %v1514_v11  ;;  %1488 = vset.pattern.permute.xlu1 %v1515_v12 }
  0x22   : > { %581 = vperm.xlu2 %1489, %v276_v5   ;;  %651 = vperm.xlu1 %1488, %v1575_v2  }
  0x26   : > { %1329 = vmatmul.msk.f32.gmra.mxu0 %vm286_vm0, %v280_v13 }
  0x28   : > { %1491 = vset.pattern.permute.xlu0 %v1516_v15 }
  0x29   : > { %785 = vperm.xlu0 %1491, %v1575_v2  }
  0x2a   : > { %648 = vperm.xlu1 %1488, %v276_v5   ;;  %1490 = vset.pattern.permute.xlu2 %v1517_v16 }
  0x2b   : > { %718 = vperm.xlu2 %1490, %v1575_v2  }
  0x2e   : > { %1330 = vmatmul.msk.f32.gmra.mxu0 %vm286_vm0, %v281_v14 }
  0x31   : > { %1496 = vset.pattern.permute.xlu0 %v1518_v18 }
  0x32   : > { %1492 = vset.pattern.permute.xlu1 %v1517_v16  ;;  %849 = vperm.xlu0 %1496, %v276_v5  }
  0x33   : > { %715 = vperm.xlu1 %1492, %v276_v5   ;;  %1493 = vset.pattern.permute.xlu2 %v1516_v15 }
  0x34   : > { %782 = vperm.xlu2 %1493, %v276_v5  }
  0x36   : > { %1331 = vmatmul.msk.f32.gmra.mxu0 %vm286_vm0, %v282_v17 }
  0x3a   : > { %1500 = vset.pattern.permute.xlu0 %v1511_v0 }
  0x3b   : > { %1494 = vset.pattern.permute.xlu1 %v1518_v18 }
  0x3c   : > { %852 = vperm.xlu1 %1494, %v1575_v2   ;;  %1495 = vset.pattern.permute.xlu2 %v1519_v24 }
  0x3d   : > { %919 = vperm.xlu2 %1495, %v1575_v2  }
  0x3e   : > { %1332 = vmatmul.msk.f32.gmra.mxu0 %vm286_vm0, %v283_v19 }
  0x44   : > { %1497 = vset.pattern.permute.xlu1 %v1519_v24 }
  0x45   : > { %916 = vperm.xlu1 %1497, %v276_v5   ;;  %1498 = vset.pattern.permute.xlu2 %v1511_v0 }
  0x46   : > { %1333 = vmatmul.msk.f32.gmra.mxu0 %vm286_vm0, %v284_v20 }
  0x4d   : > { %1499 = vset.pattern.permute.xlu1 %v1511_v0 }
  0x4e   : > { %1334 = vmatmul.msk.f32.gmra.mxu0 %vm286_vm0, %v285_v21 }
  0x6a   : > { %v448_v23 = vpop.permute.xlu2 %447 }
  0x6b   : > { %vm452_vm4 = vcmp.eq.s32.totalorder %v448_v23, %v1630_v25 }
  0x6c   : > { %v1347_v31 = vsel %vm452_vm4, 1.0, %v1520_v28 }
  0x73   : > { %v515_v32 = vpop.permute.xlu2 %514 }
  0x74   : > { %vm519_vm7 = vcmp.eq.s32.totalorder %v515_v32, %v1630_v25 }
  0x75   : > { %v1359_v37 = vsel %vm519_vm7, 1.0, %v1520_v28 }
  0x7c   : > { %v582_v38 = vpop.permute.xlu2 %581 }
  0x7d   : > { %vm586_vm9 = vcmp.eq.s32.totalorder %v582_v38, %v1630_v25 }
  0x7e   : > { %v1371_v43 = vsel %vm586_vm9, 1.0, %v1520_v28 }
  0x81   : > { %v367_v26 = vpop.permute.xlu0 %366 }
  0x82   : > { %vm369_vm2 = vcmp.eq.s32.totalorder %v367_v26, %v1630_v25  ;;  %v451_v27 = vpop.permute.xlu1 %450 }
  0x83   : > { %vm453_vm3 = vcmp.eq.s32.totalorder %v451_v27, %v1630_v25  ;;  %v1336_v29 = vsel %vm369_vm2, 1.0, %v1520_v28 }
  0x84   : > { %1337 = vmatpush.xpose.msk.msra.mxu1 %vm374_vm1, %v1336_v29  ;;  %v1348_v30 = vsel %vm453_vm3, 1.0, %v1520_v28 }
  0x85   : > { %1349 = vmatpush.xpose.msk.msra.mxu2 %vm374_vm1, %v1348_v30  ;;  %v719_v52 = vpop.permute.xlu2 %718 }
  0x86   : > { %vm721_vm12 = vcmp.eq.s32.totalorder %v719_v52, %v1630_v25 }
  0x87   : > { %v1396_v54 = vsel %vm721_vm12, 1.0, %v1520_v28 }
  0x89   : > { %v364_v33 = vpop.permute.xlu0 %363  ;;  %1350 = vmatpush.xpose.msk.msra.mxu2 %vm374_vm1, %v1347_v31 }
  0x8a   : > { %vm368_vm5 = vcmp.eq.s32.totalorder %v364_v33, %v1630_v25 }
  0x8b   : > { %v1335_v34 = vsel %vm368_vm5, 1.0, %v1520_v28  ;;  %v518_v35 = vpop.permute.xlu1 %517 }
  0x8c   : > { %vm520_vm6 = vcmp.eq.s32.totalorder %v518_v35, %v1630_v25  ;;  %1338 = vmatpush.xpose.msk.msra.mxu1 %vm374_vm1, %v1335_v34 }
  0x8d   : > { %v1360_v36 = vsel %vm520_vm6, 1.0, %v1520_v28  ;;  %1397 = vmatpush.xpose.msk.msrb.mxu2 %vm374_vm1, %v1396_v54  ;;  %vm998_vm6 = vcmask 523264  }
  0x8e   : > { %1361 = vmatpush.xpose.msk.msra.mxu3 %vm374_vm1, %v1360_v36  ;;  %v783_v60 = vpop.permute.xlu2 %782 }
  0x8f   : > { %vm787_vm15 = vcmp.eq.s32.totalorder %v783_v60, %v1630_v25 }
  0x90   : > { %v1407_v62 = vsel %vm787_vm15, 1.0, %v1520_v28 }
  0x92   : > { %v585_v39 = vpop.permute.xlu0 %584  ;;  %1362 = vmatpush.xpose.msk.msra.mxu3 %vm374_vm1, %v1359_v37 }
  0x93   : > { %vm587_vm8 = vcmp.eq.s32.totalorder %v585_v39, %v1630_v25  ;;  %v328_v40 = vpop.f32.mrf.mxu0 }
  0x94   : > { %v1372_v41 = vsel %vm587_vm8, 1.0, %v1520_v28  ;;  %v1656_v42 = vmax.f32 %v328_v40, 0.0  ;;  %v652_v44 = vpop.permute.xlu1 %651 }
  0x95   : > { %1373 = vmatpush.xpose.msk.msrb.mxu0 %vm374_vm1, %v1372_v41  ;;  %vm654_vm10 = vcmp.eq.s32.totalorder %v652_v44, %v1630_v25 }
  0x96   : > { %1339 = vmatmul.msk.f32.vlgmr.msra.gmra.mxu1 %vm374_vm1, %v1656_v42  ;;  %1351 = vmatmul.msk.f32.vlgmr.msra.gmra.mxu2 %vm374_vm1, %v1656_v42  ;;  %v1384_v45 = vsel %vm654_vm10, 1.0, %v1520_v28 }
  0x97   : > { %1363 = vmatmul.msk.f32.vlgmr.msra.gmra.mxu3 %vm374_vm1, %v1656_v42  ;;  %1385 = vmatpush.xpose.msk.msrb.mxu1 %vm374_vm1, %v1384_v45  ;;  %v920_v10 = vpop.permute.xlu2 %919 }
  0x98   : > { %vm922_vm4 = vcmp.eq.s32.totalorder %v920_v10, %v1630_v25 }
  0x99   : > { %1374 = vmatpush.xpose.msk.msrb.mxu0 %vm374_vm1, %v1371_v43  ;;  %v1432_v11 = vsel %vm922_vm4, 1.0, %v1520_v28 }
  0x9b   : > { %v331_v46 = vpop.f32.mrf.mxu0  ;;  %v786_v58 = vpop.permute.xlu0 %785 }
  0x9c   : > { %v1670_v47 = vmax.f32 %v331_v46, 0.0  ;;  %1375 = vmatmul.msk.f32.vlgmr.msrb.gmra.mxu0 %vm374_vm1, %v1656_v42  ;;  %v649_v48 = vpop.permute.xlu1 %648  ;;  %vm788_vm14 = vcmp.eq.s32.totalorder %v786_v58, %v1630_v25 }
  0x9d   : > { %vm653_vm11 = vcmp.eq.s32.totalorder %v649_v48, %v1630_v25  ;;  %v1408_v59 = vsel %vm788_vm14, 1.0, %v1520_v28 }
  0x9e   : > { %1340 = vmatmul.msk.f32.gmra.mxu1 %vm374_vm1, %v1670_v47  ;;  %1352 = vmatmul.msk.f32.gmra.mxu2 %vm374_vm1, %v1670_v47  ;;  %v1383_v49 = vsel %vm653_vm11, 1.0, %v1520_v28 }
  0x9f   : > { %1364 = vmatmul.msk.f32.gmra.mxu3 %vm374_vm1, %v1670_v47  ;;  %1386 = vmatpush.xpose.msk.msrb.mxu1 %vm374_vm1, %v1383_v49 }
  0xa0   : > { %1409 = vmatpush.xpose.msk.msrb.mxu3 %vm374_vm1, %v1408_v59 }
  0xa3   : > { %v334_v50 = vpop.f32.mrf.mxu0  ;;  %1433 = vmatpush.xpose.msk.msra.mxu1 %vm374_vm1, %v1432_v11 }
  0xa4   : > { %v1683_v51 = vmax.f32 %v334_v50, 0.0  ;;  %1376 = vmatmul.msk.f32.gmra.mxu0 %vm374_vm1, %v1670_v47  ;;  %1410 = vmatpush.xpose.msk.msrb.mxu3 %vm374_vm1, %v1407_v62  ;;  %v850_v2 = vpop.permute.xlu0 %849 }
  0xa5   : > { %v716_v53 = vpop.permute.xlu1 %715  ;;  %vm854_vm3 = vcmp.eq.s32.totalorder %v850_v2, %v1630_v25 }
  0xa6   : > { %1341 = vmatmul.msk.f32.gmra.mxu1 %vm374_vm1, %v1683_v51  ;;  %1353 = vmatmul.msk.f32.gmra.mxu2 %vm374_vm1, %v1683_v51  ;;  %vm720_vm13 = vcmp.eq.s32.totalorder %v716_v53, %v1630_v25  ;;  %v1419_v5 = vsel %vm854_vm3, 1.0, %v1520_v28 }
  0xa7   : > { %1365 = vmatmul.msk.f32.gmra.mxu3 %vm374_vm1, %v1683_v51  ;;  %v1395_v57 = vsel %vm720_vm13, 1.0, %v1520_v28 }
  0xa8   : > { %1398 = vmatpush.xpose.msk.msrb.mxu2 %vm374_vm1, %v1395_v57  ;;  %1100 = vmatpush.msra.mxu3 %v1577_v3 }
  0xaa   : > { %1101 = vmatpush.msra.mxu3 %v1579_v4 }
  0xab   : > { %v337_v55 = vpop.f32.mrf.mxu0 }
  0xac   : > { %v1697_v56 = vmax.f32 %v337_v55, 0.0  ;;  %1377 = vmatmul.msk.f32.gmra.mxu0 %vm374_vm1, %v1683_v51  ;;  %1102 = vmatpush.msra.mxu3 %v1584_v6 }
  0xae   : > { %1342 = vmatmul.msk.f32.gmra.mxu1 %vm374_vm1, %v1697_v56  ;;  %1354 = vmatmul.msk.f32.gmra.mxu2 %vm374_vm1, %v1697_v56  ;;  %v853_v61 = vpop.permute.xlu1 %852 }
  0xaf   : > { %1366 = vmatmul.msk.f32.gmra.mxu3 %vm374_vm1, %v1697_v56  ;;  %vm855_vm2 = vcmp.eq.s32.totalorder %v853_v61, %v1630_v25 }
  0xb0   : > { %v1420_v63 = vsel %vm855_vm2, 1.0, %v1520_v28  ;;  %1103 = vmatpush.msra.mxu3 %v1587_v7 }
  0xb1   : > { %1421 = vmatpush.xpose.msk.msra.mxu0 %vm374_vm1, %v1420_v63 }
  0xb3   : > { %v340_v0 = vpop.f32.mrf.mxu0 }
  0xb4   : > { %v1717_v1 = vmax.f32 %v340_v0, 0.0  ;;  %1378 = vmatmul.msk.f32.gmra.mxu0 %vm374_vm1, %v1697_v56 }
  0xb5   : > { %1422 = vmatpush.xpose.msk.msra.mxu0 %vm374_vm1, %v1419_v5 }
  0xb6   : > { %1343 = vmatmul.msk.f32.gmra.mxu1 %vm374_vm1, %v1717_v1  ;;  %1355 = vmatmul.msk.f32.gmra.mxu2 %vm374_vm1, %v1717_v1 }
  0xb7   : > { %1367 = vmatmul.msk.f32.gmra.mxu3 %vm374_vm1, %v1717_v1  ;;  %v917_v12 = vpop.permute.xlu1 %916 }
  0xb8   : > { %vm921_vm5 = vcmp.eq.s32.totalorder %v917_v12, %v1630_v25 }
  0xb9   : > { %v1431_v13 = vsel %vm921_vm5, 1.0, %v1520_v28 }
  0xba   : > { %1434 = vmatpush.xpose.msk.msra.mxu1 %vm374_vm1, %v1431_v13 }
  0xbb   : > { %v343_v8 = vpop.f32.mrf.mxu0 }
  0xbc   : > { %v1734_v9 = vmax.f32 %v343_v8, 0.0  ;;  %1379 = vmatmul.msk.f32.gmra.mxu0 %vm374_vm1, %v1717_v1 }
  0xbe   : > { %1344 = vmatmul.msk.f32.gmra.mxu1 %vm374_vm1, %v1734_v9  ;;  %1356 = vmatmul.msk.f32.gmra.mxu2 %vm374_vm1, %v1734_v9 }
  0xbf   : > { %1368 = vmatmul.msk.f32.gmra.mxu3 %vm374_vm1, %v1734_v9 }
  0xc3   : > { %v346_v3 = vpop.f32.mrf.mxu0 }
  0xc4   : > { %v1745_v4 = vmax.f32 %v346_v3, 0.0  ;;  %1380 = vmatmul.msk.f32.gmra.mxu0 %vm374_vm1, %v1734_v9 }
  0xc6   : > { %1345 = vmatmul.msk.f32.gmra.mxu1 %vm374_vm1, %v1745_v4  ;;  %1357 = vmatmul.msk.f32.gmra.mxu2 %vm374_vm1, %v1745_v4 }
  0xc7   : > { %1369 = vmatmul.msk.f32.gmra.mxu3 %vm374_vm1, %v1745_v4 }
  0xcb   : > { %v349_v6 = vpop.f32.mrf.mxu0 }
  0xcc   : > { %v1755_v7 = vmax.f32 %v349_v6, 0.0  ;;  %1381 = vmatmul.msk.f32.gmra.mxu0 %vm374_vm1, %v1745_v4 }
  0xce   : > { %1346 = vmatmul.msk.f32.gmra.mxu1 %vm374_vm1, %v1755_v7  ;;  %1358 = vmatmul.msk.f32.gmra.mxu2 %vm374_vm1, %v1755_v7 }
  0xcf   : > { %1370 = vmatmul.msk.f32.gmra.mxu3 %vm374_vm1, %v1755_v7 }
  0xd4   : > { %1382 = vmatmul.msk.f32.gmra.mxu0 %vm374_vm1, %v1755_v7 }
  0xd6   : > { %1387 = vmatmul.msk.f32.vlgmr.msrb.gmra.mxu1 %vm374_vm1, %v1656_v42  ;;  %1399 = vmatmul.msk.f32.vlgmr.msrb.gmra.mxu2 %vm374_vm1, %v1656_v42 }
  0xd7   : > { %1411 = vmatmul.msk.f32.vlgmr.msrb.gmra.mxu3 %vm374_vm1, %v1656_v42 }
  0xdc   : > { %1423 = vmatmul.msk.f32.vlgmr.msra.gmra.mxu0 %vm374_vm1, %v1656_v42 }
  0xde   : > { %1388 = vmatmul.msk.f32.gmra.mxu1 %vm374_vm1, %v1670_v47  ;;  %1400 = vmatmul.msk.f32.gmra.mxu2 %vm374_vm1, %v1670_v47 }
  0xdf   : > { %1412 = vmatmul.msk.f32.gmra.mxu3 %vm374_vm1, %v1670_v47 }
  0xe4   : > { %1424 = vmatmul.msk.f32.gmra.mxu0 %vm374_vm1, %v1670_v47 }
  0xe6   : > { %1389 = vmatmul.msk.f32.gmra.mxu1 %vm374_vm1, %v1683_v51  ;;  %1401 = vmatmul.msk.f32.gmra.mxu2 %vm374_vm1, %v1683_v51 }
  0xe7   : > { %1413 = vmatmul.msk.f32.gmra.mxu3 %vm374_vm1, %v1683_v51 }
  0xec   : > { %1425 = vmatmul.msk.f32.gmra.mxu0 %vm374_vm1, %v1683_v51 }
  0xee   : > { %1390 = vmatmul.msk.f32.gmra.mxu1 %vm374_vm1, %v1697_v56  ;;  %1402 = vmatmul.msk.f32.gmra.mxu2 %vm374_vm1, %v1697_v56 }
  0xef   : > { %1414 = vmatmul.msk.f32.gmra.mxu3 %vm374_vm1, %v1697_v56 }
  0xf4   : > { %1426 = vmatmul.msk.f32.gmra.mxu0 %vm374_vm1, %v1697_v56 }
  0xf6   : > { %1391 = vmatmul.msk.f32.gmra.mxu1 %vm374_vm1, %v1717_v1  ;;  %1403 = vmatmul.msk.f32.gmra.mxu2 %vm374_vm1, %v1717_v1 }
  0xf7   : > { %1415 = vmatmul.msk.f32.gmra.mxu3 %vm374_vm1, %v1717_v1 }
  0xfc   : > { %1427 = vmatmul.msk.f32.gmra.mxu0 %vm374_vm1, %v1717_v1 }
  0xfe   : > { %1392 = vmatmul.msk.f32.gmra.mxu1 %vm374_vm1, %v1734_v9  ;;  %1404 = vmatmul.msk.f32.gmra.mxu2 %vm374_vm1, %v1734_v9 }
  0xff   : > { %1416 = vmatmul.msk.f32.gmra.mxu3 %vm374_vm1, %v1734_v9 }
 0x104   : > { %1428 = vmatmul.msk.f32.gmra.mxu0 %vm374_vm1, %v1734_v9 }
 0x106   : > { %1393 = vmatmul.msk.f32.gmra.mxu1 %vm374_vm1, %v1745_v4  ;;  %1405 = vmatmul.msk.f32.gmra.mxu2 %vm374_vm1, %v1745_v4 }
 0x107   : > { %1417 = vmatmul.msk.f32.gmra.mxu3 %vm374_vm1, %v1745_v4 }
 0x10c   : > { %1429 = vmatmul.msk.f32.gmra.mxu0 %vm374_vm1, %v1745_v4 }
 0x10e   : > { %1394 = vmatmul.msk.f32.gmra.mxu1 %vm374_vm1, %v1755_v7  ;;  %1406 = vmatmul.msk.f32.gmra.mxu2 %vm374_vm1, %v1755_v7 }
 0x10f   : > { %1418 = vmatmul.msk.f32.gmra.mxu3 %vm374_vm1, %v1755_v7 }
 0x113   : > { %v422_v14 = vpop.f32.mrf.mxu1 }
 0x114   : > { %1430 = vmatmul.msk.f32.gmra.mxu0 %vm374_vm1, %v1755_v7 }
 0x116   : > { %1435 = vmatmul.msk.f32.vlgmr.msra.gmra.mxu1 %vm374_vm1, %v1656_v42 }
 0x119   : > { %v481_v15 = vpop.f32.mrf.mxu2  ;;  %v615_v16 = vpop.f32.mrf.mxu0 }
 0x11a   : > { %v505_v17 = vmax.f32 %v422_v14, %v481_v15  ;;  %v548_v18 = vpop.f32.mrf.mxu3 }
 0x11b   : > { %v425_v19 = vpop.f32.mrf.mxu1 }
 0x11c   : > { %v572_v20 = vmax.f32 %v505_v17, %v548_v18 }
 0x11e   : > { %v639_v21 = vmax.f32 %v572_v20, %v615_v16  ;;  %1436 = vmatmul.msk.f32.gmra.mxu1 %vm374_vm1, %v1670_v47 }
 0x121   : > { %v484_v22 = vpop.f32.mrf.mxu2  ;;  %v618_v23 = vpop.f32.mrf.mxu0 }
 0x122   : > { %v506_v24 = vmax.f32 %v425_v19, %v484_v22  ;;  %v551_v25 = vpop.f32.mrf.mxu3 }
 0x123   : > { %v428_v26 = vpop.f32.mrf.mxu1 }
 0x124   : > { %v573_v27 = vmax.f32 %v506_v24, %v551_v25 }
 0x126   : > { %v640_v28 = vmax.f32 %v573_v27, %v618_v23  ;;  %1437 = vmatmul.msk.f32.gmra.mxu1 %vm374_vm1, %v1683_v51 }
 0x129   : > { %v487_v29 = vpop.f32.mrf.mxu2  ;;  %v621_v30 = vpop.f32.mrf.mxu0 }
 0x12a   : > { %v507_v31 = vmax.f32 %v428_v26, %v487_v29  ;;  %v554_v32 = vpop.f32.mrf.mxu3 }
 0x12b   : > { %v431_v33 = vpop.f32.mrf.mxu1 }
 0x12c   : > { %v574_v34 = vmax.f32 %v507_v31, %v554_v32 }
 0x12e   : > { %v641_v35 = vmax.f32 %v574_v34, %v621_v30  ;;  %1438 = vmatmul.msk.f32.gmra.mxu1 %vm374_vm1, %v1697_v56 }
 0x131   : > { %v490_v36 = vpop.f32.mrf.mxu2  ;;  %v624_v37 = vpop.f32.mrf.mxu0 }
 0x132   : > { %v508_v38 = vmax.f32 %v431_v33, %v490_v36  ;;  %v557_v39 = vpop.f32.mrf.mxu3 }
 0x133   : > { %v434_v40 = vpop.f32.mrf.mxu1 }
 0x134   : > { %v575_v41 = vmax.f32 %v508_v38, %v557_v39 }
 0x136   : > { %v642_v42 = vmax.f32 %v575_v41, %v624_v37  ;;  %1439 = vmatmul.msk.f32.gmra.mxu1 %vm374_vm1, %v1717_v1 }
 0x139   : > { %v493_v43 = vpop.f32.mrf.mxu2  ;;  %v627_v44 = vpop.f32.mrf.mxu0 }
 0x13a   : > { %v509_v45 = vmax.f32 %v434_v40, %v493_v43  ;;  %v560_v46 = vpop.f32.mrf.mxu3 }
 0x13b   : > { %v437_v47 = vpop.f32.mrf.mxu1 }
 0x13c   : > { %v576_v48 = vmax.f32 %v509_v45, %v560_v46 }
 0x13e   : > { %v643_v49 = vmax.f32 %v576_v48, %v627_v44  ;;  %1440 = vmatmul.msk.f32.gmra.mxu1 %vm374_vm1, %v1734_v9 }
 0x141   : > { %v496_v50 = vpop.f32.mrf.mxu2  ;;  %v630_v51 = vpop.f32.mrf.mxu0 }
 0x142   : > { %v510_v52 = vmax.f32 %v437_v47, %v496_v50  ;;  %v563_v53 = vpop.f32.mrf.mxu3  ;;  %v982_v50 = vld [vmem:[%s1993_s3] sm:$0xff] }
 0x143   : > { %v440_v54 = vpop.f32.mrf.mxu1  ;;  %1451 = vmatmul.msk.f32.vlgmr.msra.gmra.mxu3 %vm286_vm0, %v982_v50 }
 0x144   : > { %v577_v55 = vmax.f32 %v510_v52, %v563_v53 }
 0x146   : > { %v644_v56 = vmax.f32 %v577_v55, %v630_v51  ;;  %1441 = vmatmul.msk.f32.gmra.mxu1 %vm374_vm1, %v1745_v4 }
 0x149   : > { %v499_v57 = vpop.f32.mrf.mxu2  ;;  %v633_v58 = vpop.f32.mrf.mxu0 }
 0x14a   : > { %v511_v59 = vmax.f32 %v440_v54, %v499_v57  ;;  %v566_v60 = vpop.f32.mrf.mxu3 }
 0x14b   : > { %v443_v61 = vpop.f32.mrf.mxu1 }
 0x14c   : > { %v578_v62 = vmax.f32 %v511_v59, %v566_v60  ;;  %v983_v59 = vld [vmem:[%s1993_s3 + $0x8] sm:$0xff] }
 0x14d   : > { %1452 = vmatmul.msk.f32.gmra.mxu3 %vm286_vm0, %v983_v59 }
 0x14e   : > { %v645_v63 = vmax.f32 %v578_v62, %v633_v58  ;;  %1442 = vmatmul.msk.f32.gmra.mxu1 %vm374_vm1, %v1755_v7 }
 0x151   : > { %v502_v0 = vpop.f32.mrf.mxu2  ;;  %v636_v2 = vpop.f32.mrf.mxu0 }
 0x152   : > { %v569_v1 = vpop.f32.mrf.mxu3  ;;  %v512_v46 = vmax.f32 %v443_v61, %v502_v0 }
 0x153   : > { %v682_v5 = vpop.f32.mrf.mxu1 }
 0x154   : > { %v706_v8 = vmax.f32 %v639_v21, %v682_v5  ;;  %v579_v47 = vmax.f32 %v512_v46, %v569_v1 }
 0x156   : > { %v646_v51 = vmax.f32 %v579_v47, %v636_v2 }
 0x159   : > { %v749_v9 = vpop.f32.mrf.mxu2  ;;  %v883_v12 = vpop.f32.mrf.mxu0 }
 0x15a   : > { %v773_v3 = vmax.f32 %v706_v8, %v749_v9  ;;  %v816_v6 = vpop.f32.mrf.mxu3 }
 0x15b   : > { %v685_v10 = vpop.f32.mrf.mxu1 }
 0x15c   : > { %v840_v4 = vmax.f32 %v773_v3, %v816_v6  ;;  %v1853_v11 = vmax.f32 %v640_v28, %v685_v10 }
 0x15e   : > { %v907_v13 = vmax.f32 %v840_v4, %v883_v12  ;;  %v984_v12 = vld [vmem:[%s1993_s3 + $0x10] sm:$0xff] }
 0x15f   : > { %1453 = vmatmul.msk.f32.gmra.mxu3 %vm286_vm0, %v984_v12 }
 0x161   : > { %v1857_v22 = vpop.f32.mrf.mxu2  ;;  %v1859_v26 = vpop.f32.mrf.mxu0 }
 0x162   : > { %v819_v24 = vpop.f32.mrf.mxu3  ;;  %v774_v4 = vmax.f32 %v1853_v11, %v1857_v22 }
 0x163   : > { %v688_v14 = vpop.f32.mrf.mxu1 }
 0x164   : > { %v1855_v15 = vmax.f32 %v641_v35, %v688_v14 }
 0x169   : > { %v755_v27 = vpop.f32.mrf.mxu2  ;;  %v1863_v31 = vpop.f32.mrf.mxu0 }
 0x16a   : > { %v822_v28 = vpop.f32.mrf.mxu3  ;;  %v775_v9 = vmax.f32 %v1855_v15, %v755_v27  ;;  %v841_v15 = vmax.f32 %v774_v4, %v819_v24  ;;  %v990_v24 = vld [vmem:[%s1994_s4] sm:$0xff] }
 0x16b   : > { %v691_v16 = vpop.f32.mrf.mxu1 }
 0x16c   : > { %v709_v17 = vmax.f32 %v642_v42, %v691_v16 }
 0x171   : > { %v758_v32 = vpop.f32.mrf.mxu2  ;;  %v892_v35 = vpop.f32.mrf.mxu0 }
 0x172   : > { %v825_v34 = vpop.f32.mrf.mxu3  ;;  %v776_v1 = vmax.f32 %v709_v17, %v758_v32  ;;  %v842_v17 = vmax.f32 %v775_v9, %v822_v28  ;;  %v1138_v28 = vld [vmem:[%s1995_s5 + $0x8] sm:$0xff]  ;;  %v1140_v32 = vld [vmem:[%s1995_s5 + $0x18] sm:$0xff] }
 0x173   : > { %v694_v7 = vpop.f32.mrf.mxu1  ;;  %1152 = vperm.xlu1 %1499, %v1138_v28   ;;  %1162 = vperm.xlu0 %1500, %v1140_v32  }
 0x174   : > { %v710_v18 = vmax.f32 %v643_v49, %v694_v7  ;;  %v909_v11 = vmax.f32 %v842_v17, %v1863_v31  ;;  %v987_v31 = vld [vmem:[%s1993_s3 + $0x28] sm:$0xff] }
 0x179   : > { %v761_v36 = vpop.f32.mrf.mxu2  ;;  %v895_v39 = vpop.f32.mrf.mxu0 }
 0x17a   : > { %v828_v38 = vpop.f32.mrf.mxu3  ;;  %v777_v62 = vmax.f32 %v710_v18, %v761_v36  ;;  %v993_v36 = vld [vmem:[%s1994_s4 + $0x18] sm:$0xff] }
 0x17b   : > { %v697_v19 = vpop.f32.mrf.mxu1 }
 0x17c   : > { %v711_v20 = vmax.f32 %v644_v56, %v697_v19  ;;  %v844_v3 = vmax.f32 %v777_v62, %v828_v38  ;;  %v1139_v38 = vld [vmem:[%s1995_s5 + $0x10] sm:$0xff] }
 0x17e   : > { %v911_v7 = vmax.f32 %v844_v3, %v895_v39  ;;  %v1143_v39 = vld [vmem:[%s1995_s5 + $0x30] sm:$0xff] }
 0x181   : > { %v764_v40 = vpop.f32.mrf.mxu2  ;;  %v898_v44 = vpop.f32.mrf.mxu0 }
 0x182   : > { %v831_v42 = vpop.f32.mrf.mxu3  ;;  %v778_v60 = vmax.f32 %v711_v20, %v764_v40  ;;  %v994_v40 = vld [vmem:[%s1994_s4 + $0x20] sm:$0xff] }
 0x183   : > { %v700_v21 = vpop.f32.mrf.mxu1 }
 0x184   : > { %v712_v23 = vmax.f32 %v645_v63, %v700_v21  ;;  %v845_v2 = vmax.f32 %v778_v60, %v831_v42  ;;  %v985_v21 = vld [vmem:[%s1993_s3 + $0x18] sm:$0xff]  ;;  %v995_v42 = vld [vmem:[%s1994_s4 + $0x28] sm:$0xff] }
 0x185   : > { %1454 = vmatmul.msk.f32.gmra.mxu3 %vm286_vm0, %v985_v21 }
 0x186   : > { %v912_v14 = vmax.f32 %v845_v2, %v898_v44  ;;  %v996_v44 = vld [vmem:[%s1994_s4 + $0x30] sm:$0xff] }
 0x189   : > { %v767_v45 = vpop.f32.mrf.mxu2  ;;  %v901_v52 = vpop.f32.mrf.mxu0 }
 0x18a   : > { %v834_v48 = vpop.f32.mrf.mxu3  ;;  %v779_v57 = vmax.f32 %v712_v23, %v767_v45  ;;  %v908_v23 = vmax.f32 %v841_v15, %v1859_v26  ;;  %v986_v26 = vld [vmem:[%s1993_s3 + $0x20] sm:$0xff]  ;;  %v997_v45 = vld [vmem:[%s1994_s4 + $0x38] sm:$0xff] }
 0x18b   : > { %v703_v25 = vpop.f32.mrf.mxu1 }
 0x18c   : > { %v713_v54 = vmax.f32 %v646_v51, %v703_v25  ;;  %v846_v63 = vmax.f32 %v779_v57, %v834_v48 }
 0x18d   : > { %1455 = vmatmul.msk.f32.gmra.mxu3 %vm286_vm0, %v986_v26 }
 0x18e   : > { %v913_v6 = vmax.f32 %v846_v63, %v901_v52 }
 0x191   : > { %v770_v53 = vpop.f32.mrf.mxu2  ;;  %v904_v0 = vpop.f32.mrf.mxu0 }
 0x192   : > { %v780_v55 = vmax.f32 %v713_v54, %v770_v53  ;;  %v837_v58 = vpop.f32.mrf.mxu3 }
 0x193   : > { %v950_v29 = vpop.f32.mrf.mxu1 }
 0x194   : > { %v1861_v30 = vmax.f32 %v907_v13, %v950_v29  ;;  %v847_v61 = vmax.f32 %v780_v55, %v837_v58  ;;  %v843_v13 = vmax.f32 %v776_v1, %v825_v34  ;;  %v991_v29 = vld [vmem:[%s1994_s4 + $0x8] sm:$0xff]  ;;  %v988_v34 = vld [vmem:[%s1993_s3 + $0x30] sm:$0xff] }
 0x195   : > { %1456 = vmatmul.msk.f32.gmra.mxu3 %vm286_vm0, %v987_v31 }
 0x196   : > { %v914_v5 = vmax.f32 %v847_v61, %v904_v0  ;;  %v910_v19 = vmax.f32 %v843_v13, %v892_v35  ;;  %v1141_v35 = vld [vmem:[%s1995_s5 + $0x20] sm:$0xff] }
 0x197   : > { %1167 = vperm.xlu1 %1499, %v1141_v35  }
 0x19b   : > { %v1865_v33 = vpop.f32.mrf.mxu1 }
 0x19c   : > { %v975_v27 = vmax.f32 %v908_v23, %v1865_v33  ;;  %v1137_v33 = vld [vmem:[%s1995_s5] sm:$0xff] }
 0x19d   : > { %1147 = vperm.xlu2 %1498, %v1137_v33   ;;  %1457 = vmatmul.msk.f32.gmra.mxu3 %vm286_vm0, %v988_v34 }
 0x19f   : > { %1177 = vperm.xlu1 %1499, %v1143_v39  }
 0x1a3   : > { %v956_v37 = vpop.f32.mrf.mxu1 }
 0x1a4   : > { %v976_v25 = vmax.f32 %v909_v11, %v956_v37  ;;  %v989_v37 = vld [vmem:[%s1993_s3 + $0x38] sm:$0xff] }
 0x1a5   : > { %1458 = vmatmul.msk.f32.gmra.mxu3 %vm286_vm0, %v989_v37  ;;  %1157 = vperm.xlu2 %1498, %v1139_v38  }
 0x1ab   : > { %v959_v41 = vpop.f32.mrf.mxu1 }
 0x1ac   : > { %v977_v22 = vmax.f32 %v910_v19, %v959_v41  ;;  %v1142_v41 = vld [vmem:[%s1995_s5 + $0x28] sm:$0xff] }
 0x1ad   : > { %1172 = vperm.xlu2 %1498, %v1142_v41  }
 0x1b3   : > { %v962_v43 = vpop.f32.mrf.mxu1 }
 0x1b4   : > { %v978_v20 = vmax.f32 %v911_v7, %v962_v43  ;;  %v1144_v43 = vld [vmem:[%s1995_s5 + $0x38] sm:$0xff] }
 0x1b5   : > { %1182 = vperm.xlu2 %1498, %v1144_v43  }
 0x1bb   : > { %v965_v49 = vpop.f32.mrf.mxu1 }
 0x1bc   : > { %v979_v18 = vmax.f32 %v912_v14, %v965_v49 }
 0x1c3   : > { %v968_v56 = vpop.f32.mrf.mxu1 }
 0x1c4   : > { %v980_v16 = vmax.f32 %v913_v6, %v968_v56 }
 0x1c6   : > { %v1105_v46 = vpop.f32.mrf.mxu3 }
 0x1cb   : > { %v971_v8 = vpop.f32.mrf.mxu1 }
 0x1cc   : > { %v981_v10 = vmax.f32 %v914_v5, %v971_v8 }
 0x1ce   : > { %1031 = vmatpush.msra.mxu2 %v981_v10 }
 0x1d0   : > { %1032 = vmatpush.msra.mxu2 %v980_v16  ;;  %v1108_v47 = vpop.f32.mrf.mxu3 }
 0x1d2   : > { %1033 = vmatpush.msra.mxu2 %v979_v18 }
 0x1d4   : > { %1034 = vmatpush.msra.mxu2 %v978_v20 }
 0x1d6   : > { %1035 = vmatpush.msra.mxu2 %v977_v22 }
 0x1d8   : > { %1036 = vmatpush.msra.mxu2 %v976_v25 }
 0x1da   : > { %1037 = vmatpush.msra.mxu2 %v975_v27 }
 0x1dc   : > { %1038 = vmatpush.msra.mxu2 %v1861_v30  ;;  %v992_v30 = vld [vmem:[%s1994_s4 + $0x10] sm:$0xff] }
 0x1dd   : > { %1443 = vmatmul.msk.f32.vlgmr.msra.gmra.mxu2 %vm998_vm6, %v990_v24 }
 0x1e2   : > { %v1111_v49 = vpop.f32.mrf.mxu3 }
 0x1e5   : > { %1444 = vmatmul.msk.f32.gmra.mxu2 %vm998_vm6, %v991_v29  ;;  %v1153_v58 = vpop.permute.xlu1 %1152  ;;  %v1163_v12 = vpop.permute.xlu0 %1162 }
 0x1ed   : > { %1445 = vmatmul.msk.f32.gmra.mxu2 %vm998_vm6, %v992_v30 }
 0x1f5   : > { %1446 = vmatmul.msk.f32.gmra.mxu2 %vm998_vm6, %v993_v36 }
 0x1f7   : > { %v1148_v56 = vpop.permute.xlu2 %1147 }
 0x1fd   : > { %1447 = vmatmul.msk.f32.gmra.mxu2 %vm998_vm6, %v994_v40 }
 0x1ff   : > { %v1158_v1 = vpop.permute.xlu2 %1157 }
 0x205   : > { %1448 = vmatmul.msk.f32.gmra.mxu2 %vm998_vm6, %v995_v42 }
 0x207   : > { %v1173_v21 = vpop.permute.xlu2 %1172 }
 0x208   : > { %v1114_v51 = vpop.f32.mrf.mxu3 }
 0x209   : > { %v1168_v9 = vpop.permute.xlu1 %1167 }
 0x20d   : > { %1449 = vmatmul.msk.f32.gmra.mxu2 %vm998_vm6, %v996_v44 }
 0x210   : > { %v1117_v54 = vpop.f32.mrf.mxu3 }
 0x211   : > { %v1178_v28 = vpop.permute.xlu1 %1177 }
 0x215   : > { %1450 = vmatmul.msk.f32.gmra.mxu2 %vm998_vm6, %v997_v45  ;;  %v1183_v45 = vpop.permute.xlu2 %1182 }
 0x218   : > { %v1120_v57 = vpop.f32.mrf.mxu3 }
 0x220   : > { %v1123_v4 = vpop.f32.mrf.mxu3 }
 0x228   : > { %v1126_v33 = vpop.f32.mrf.mxu3 }
 0x260   : > { %v1040_v48 = vpop.f32.mrf.mxu2 }
 0x261   : > { %v1106_v60 = vadd.f32 %v1105_v46, %v1040_v48 }
 0x263   : > { %v1129_v2 = vmax.f32 %v1106_v60, 0.0 }
 0x265   : > { %v1185_v14 = vadd.f32 %v1148_v56, %v1129_v2 }
 0x267   : > { %v1193_v19 = vmul.f32 %v1185_v14, %v1185_v14 }
 0x268   : > { %v1043_v50 = vpop.f32.mrf.mxu2 }
 0x269   : > { %v1109_v59 = vadd.f32 %v1108_v47, %v1043_v50  ;;  %v1201_v26 = vsel %vm374_vm1, %v1193_v19, 0.0 }
 0x26b   : > { %v1130_v62 = vmax.f32 %v1109_v59, 0.0 }
 0x26d   : > { %v1962_v10 = vadd.f32 %v1153_v58, %v1130_v62 }
 0x26f   : > { %v1194_v7 = vmul.f32 %v1962_v10, %v1962_v10 }
 0x270   : > { %v1046_v52 = vpop.f32.mrf.mxu2 }
 0x271   : > { %v1112_v61 = vadd.f32 %v1111_v49, %v1046_v52  ;;  %v1202_v23 = vsel %vm374_vm1, %v1194_v7, 0.0 }
 0x272   : > { %v1203_v32 = vadd.f32 %v1202_v23, %v1201_v26 }
 0x273   : > { %v1131_v5 = vmax.f32 %v1112_v61, 0.0 }
 0x275   : > { %v1187_v16 = vadd.f32 %v1158_v1, %v1131_v5 }
 0x277   : > { %v1195_v20 = vmul.f32 %v1187_v16, %v1187_v16 }
 0x278   : > { %v1049_v53 = vpop.f32.mrf.mxu2 }
 0x279   : > { %v1115_v63 = vadd.f32 %v1114_v51, %v1049_v53  ;;  %v1204_v29 = vsel %vm374_vm1, %v1195_v20, 0.0 }
 0x27a   : > { %v1205_v36 = vadd.f32 %v1204_v29, %v1203_v32 }
 0x27b   : > { %v1132_v3 = vmax.f32 %v1115_v63, 0.0 }
 0x27d   : > { %v1188_v18 = vadd.f32 %v1163_v12, %v1132_v3 }
 0x27f   : > { %v1196_v24 = vmul.f32 %v1188_v18, %v1188_v18 }
 0x280   : > { %v1052_v55 = vpop.f32.mrf.mxu2 }
 0x281   : > { %v1118_v8 = vadd.f32 %v1117_v54, %v1052_v55  ;;  %v1206_v35 = vsel %vm374_vm1, %v1196_v24, 0.0 }
 0x282   : > { %v1207_v41 = vadd.f32 %v1206_v35, %v1205_v36 }
 0x283   : > { %v1133_v13 = vmax.f32 %v1118_v8, 0.0 }
 0x285   : > { %v1189_v22 = vadd.f32 %v1168_v9, %v1133_v13 }
 0x287   : > { %v1197_v31 = vmul.f32 %v1189_v22, %v1189_v22 }
 0x288   : > { %v1055_v0 = vpop.f32.mrf.mxu2 }
 0x289   : > { %v1121_v6 = vadd.f32 %v1120_v57, %v1055_v0  ;;  %v1208_v38 = vsel %vm374_vm1, %v1197_v31, 0.0 }
 0x28a   : > { %v1209_v44 = vadd.f32 %v1208_v38, %v1207_v41 }
 0x28b   : > { %v1134_v17 = vmax.f32 %v1121_v6, 0.0 }
 0x28d   : > { %v1190_v27 = vadd.f32 %v1173_v21, %v1134_v17 }
 0x28f   : > { %v1198_v34 = vmul.f32 %v1190_v27, %v1190_v27 }
 0x290   : > { %v1058_v15 = vpop.f32.mrf.mxu2 }
 0x291   : > { %v1124_v11 = vadd.f32 %v1123_v4, %v1058_v15  ;;  %v1210_v42 = vsel %vm374_vm1, %v1198_v34, 0.0 }
 0x292   : > { %v1211_v48 = vadd.f32 %v1210_v42, %v1209_v44 }
 0x293   : > { %v1135_v25 = vmax.f32 %v1124_v11, 0.0 }
 0x295   : > { %v1191_v30 = vadd.f32 %v1178_v28, %v1135_v25 }
 0x297   : > { %v1199_v40 = vmul.f32 %v1191_v30, %v1191_v30 }
 0x298   : > { %v1061_v37 = vpop.f32.mrf.mxu2 }
 0x299   : > { %v1127_v39 = vadd.f32 %v1126_v33, %v1061_v37  ;;  %v1212_v46 = vsel %vm374_vm1, %v1199_v40, 0.0 }
 0x29a   : > { %v1213_v50 = vadd.f32 %v1212_v46, %v1211_v48 }
 0x29b   : > { %v1136_v43 = vmax.f32 %v1127_v39, 0.0 }
 0x29d   : > { %v1192_v47 = vadd.f32 %v1183_v45, %v1136_v43 }
 0x29f   : > { %v1200_v49 = vmul.f32 %v1192_v47, %v1192_v47 }
 0x2a1   : > { %v1214_v51 = vsel %vm374_vm1, %v1200_v49, 0.0 }
 0x2a2   : > { %v1215_v52 = vadd.f32 %v1214_v51, %v1213_v50 }
 0x2a4   : > { %v1216_v53 = vrot.slane %v1215_v52, 4 }
 0x2a6   : > { %v1217_v54 = vadd.f32 %v1216_v53, %v1215_v52 }
 0x2a8   : > { %v1218_v55 = vrot.slane %v1217_v54, 2 }
 0x2aa   : > { %v1219_v56 = vadd.f32 %v1218_v55, %v1217_v54 }
 0x2ac   : > { %v1220_v57 = vrot.slane %v1219_v56, 1 }
 0x2ae   : > { %v1221_v58 = vadd.f32 %v1220_v57, %v1219_v56 }
 0x2b0   : > { %v1222_v59 = vmax.f32 %v1221_v58, 1e-24 }
 0x2b2   : > { %1501 = vrsqrt.f32 %v1222_v59  ;;  %vm1229_vm7 = vweird.f32 %v1222_v59 }
 0x2b8   : > { %v1502_v60 = vpop.eup %1501 }
 0x2b9   : > { %v1224_v61 = vmul.f32 %v1502_v60, %v1222_v59  ;;  %vm1230_vm0 = vweird.f32 %v1502_v60 }
 0x2ba   : > { %vm1231_vm8 = vmor %vm1229_vm7, %vm1230_vm0 }
 0x2bb   : > { %v1225_v62 = vmul.f32 %v1502_v60, %v1224_v61 }
 0x2bd   : > { %v1226_v63 = vmul.f32 0.5, %v1225_v62 }
 0x2bf   : > { %v1227_v0 = vsub.f32 1.5, %v1226_v63 }
 0x2c1   : > { %v1228_v1 = vmul.f32 %v1502_v60, %v1227_v0 }
 0x2c3   : > { %v1232_v2 = vsel %vm1231_vm8, %v1502_v60, %v1228_v1 }
 0x2c4   : > { %v1233_v5 = vmul.f32 %v1232_v2, %v1185_v14  ;;  %v1234_v8 = vmul.f32 %v1232_v2, %v1962_v10  ;;  %v1235_v9 = vmul.f32 %v1232_v2, %v1187_v16  ;;  %v1236_v3 = vmul.f32 %v1232_v2, %v1188_v18 }
 0x2c5   : > { %v1237_v6 = vmul.f32 %v1232_v2, %v1189_v22  ;;  %v1238_v4 = vmul.f32 %v1232_v2, %v1190_v27  ;;  %v1239_v12 = vmul.f32 %v1232_v2, %v1191_v30  ;;  %v1240_v13 = vmul.f32 %v1232_v2, %v1192_v47 }
 0x2c6   : > { %1241 = vst.msk [vmem:[%s271_s8] sm:$0xff] %vm374_vm1, %v1233_v5 }
 0x2c7   : > { %1242 = vst.msk [vmem:[%s271_s8 + $0x8] sm:$0xff] %vm374_vm1, %v1234_v8 }
 0x2c8   : > { %1243 = vst.msk [vmem:[%s271_s8 + $0x10] sm:$0xff] %vm374_vm1, %v1235_v9 }
 0x2c9   : > { %1244 = vst.msk [vmem:[%s271_s8 + $0x18] sm:$0xff] %vm374_vm1, %v1236_v3 }
 0x2ca   : > { %1245 = vst.msk [vmem:[%s271_s8 + $0x20] sm:$0xff] %vm374_vm1, %v1237_v6 }
 0x2cb   : > { %1246 = vst.msk [vmem:[%s271_s8 + $0x28] sm:$0xff] %vm374_vm1, %v1238_v4 }
 0x2cc   : > { %1247 = vst.msk [vmem:[%s271_s8 + $0x30] sm:$0xff] %vm374_vm1, %v1239_v12 }
 0x2cd   : > { %1248 = vst.msk [vmem:[%s271_s8 + $0x38] sm:$0xff] %vm374_vm1, %v1240_v13 }
 0x2ce PF: > { %s16_s21 = sadd.s32 1, %s1509_s21  }
 0x2cf   : > { %p13_p4 = scmp.ge.s32.totalorder %s16_s21, 4  }
 0x2d1   :  { %15 = sbr.rel (!%p13_p4) target bundleno = 1 (0x1), region = 77 }

</bundles_post_ra>
